<compile_context>
chip_gen: v7x
topology: tpu7x:2x2x1
jax: 0.10.0
libtpu: 0.0.40
codegen_flags: <defaults>
</compile_context>

<pallas_src>
import functools
import math

import jax
import jax.numpy as jnp
from jax.experimental import pallas as pl
from jax.experimental.pallas import tpu as pltpu


def _channel_attention_kernel(w_ref, x_ref, o_ref, *, hw_valid):
    # w_ref : (k,) f32 conv1d taps in SMEM
    # x_ref / o_ref : (b_tile, C, HW_pad) blocks in VMEM (f32 or bf16)
    x = x_ref[...]
    C = x.shape[1]
    hw_pad = x.shape[2]
    k = w_ref.shape[0]
    pad = (k - 1) // 2

    # Global avg / max pools over the spatial (lane) axis. Accumulate in f32
    # even for bf16 I/O. Zero padding does not change the sum; mask it for max.
    if hw_pad != hw_valid:
        lane = jax.lax.broadcasted_iota(jnp.int32, x.shape, 2)
        xm = jnp.where(lane < hw_valid, x, jnp.full_like(x, -jnp.inf))
    else:
        xm = x
    s = jnp.sum(x, axis=-1, dtype=jnp.float32)            # (b_tile, C)
    m = jnp.max(xm, axis=-1).astype(jnp.float32)          # (b_tile, C)

    # Conv1d has no bias => conv(avg) + conv(max) == conv(avg + max).
    pooled = s * (1.0 / hw_valid) + m                     # (b_tile, C) f32

    # Zero-padded cross-correlation over the channel axis; k is tiny (1 or 3),
    # unrolled statically. Data here is only b_tile*C scalars -> negligible.
    if pad > 0:
        z = jnp.zeros((pooled.shape[0], pad), jnp.float32)
        vp = jnp.concatenate([z, pooled, z], axis=-1)     # (b_tile, C + 2*pad)
    else:
        vp = pooled
    conv = jnp.zeros_like(pooled)
    for j in range(k):
        conv = conv + w_ref[j] * vp[:, j:j + C]
    gate = jax.nn.sigmoid(conv)                           # (b_tile, C) f32

    # Re-read x from VMEM for the scale so the whole block isn't held live in
    # vregs across reduce + scale (lets regalloc stream loads/stores).
    o_ref[...] = x_ref[...] * gate[:, :, None].astype(o_ref.dtype)


def _largest_divisor_leq(n, cap):
    cap = max(1, min(n, cap))
    for d in range(cap, 0, -1):
        if n % d == 0:
            return d
    return 1


def channel_attention_conv(x, conv_w):
    """x: (B, C, H, W) float32 or bfloat16; conv_w: (k,) conv1d taps (k odd)."""
    B, C, H, W = x.shape
    k = int(conv_w.shape[0])
    assert k % 2 == 1, "ECA channel-attention kernel size must be odd"

    HW = H * W
    hw_pad = ((HW + 127) // 128) * 128        # lane-dense (multiple of 128) stores

    xf = x.reshape(B, C, HW)
    if hw_pad != HW:
        xf = jnp.pad(xf, ((0, 0), (0, 0), (0, hw_pad - HW)))

    itemsize = jnp.dtype(x.dtype).itemsize
    row_bytes = C * hw_pad * itemsize
    # ~2 MiB blocks: with input+output double-buffered (~4x block) this fits
    # every generation's default scoped VMEM (16 MiB v5e, 32 MiB v6e/v7x).
    target_block_bytes = 2 * 1024 * 1024
    b_tile = _largest_divisor_leq(B, max(1, target_block_bytes // row_bytes))
    block_bytes = b_tile * row_bytes

    vmem_limit = None
    if 4 * block_bytes > 12 * 1024 * 1024:
        # A single row is bigger than the target block: raise the scoped VMEM
        # limit (stay well under v7x's 64 MiB physical VMEM).
        vmem_limit = int(min(4 * block_bytes + (8 << 20), 56 << 20))
    # TODO(synk): if one (1, C, H*W) row exceeds ~12 MiB, restructure into a
    # two-phase kernel that tiles H*W (pool pass + scale pass) instead of one
    # giant block.

    kernel = functools.partial(_channel_attention_kernel, hw_valid=HW)
    out = pl.pallas_call(
        kernel,
        out_shape=jax.ShapeDtypeStruct((B, C, hw_pad), x.dtype),
        grid=(B // b_tile,),
        in_specs=[
            pl.BlockSpec(memory_space=pltpu.MemorySpace.SMEM),        # conv taps
            pl.BlockSpec((b_tile, C, hw_pad), lambda b: (b, 0, 0)),   # x rows
        ],
        out_specs=pl.BlockSpec((b_tile, C, hw_pad), lambda b: (b, 0, 0)),
        compiler_params=pltpu.CompilerParams(
            dimension_semantics=("parallel",),   # batch rows are independent
            vmem_limit_bytes=vmem_limit,
        ),
        cost_estimate=pl.CostEstimate(
            flops=3 * B * C * HW,
            transcendentals=B * C,
            bytes_accessed=2 * B * C * hw_pad * itemsize + k * 4,
        ),
    )(conv_w.astype(jnp.float32), xf)

    if hw_pad != HW:
        out = out[:, :, :HW]
    return out.reshape(B, C, H, W)


def _eca_kernel_size(in_channel, gamma=2, b=1):
    k = int(abs((math.log(in_channel, 2) + b) / gamma))
    return k if k % 2 else k + 1


def _reference(x, conv_w):
    # Pure-JAX reference mirroring the PyTorch forward.
    B, C, H, W = x.shape
    k = conv_w.shape[0]
    pad = (k - 1) // 2
    avg = jnp.mean(x, axis=(2, 3))          # (B, C)
    mx = jnp.max(x, axis=(2, 3))            # (B, C)

    def conv1d(v):
        vp = jnp.pad(v, ((0, 0), (pad, pad)))
        return sum(conv_w[j] * vp[:, j:j + C] for j in range(k))

    gate = jax.nn.sigmoid(conv1d(avg) + conv1d(mx))
    return x * gate[:, :, None, None]


if __name__ == "__main__":
    B, C, H, W = 2, 16, 16, 16
    kernel_size = _eca_kernel_size(C)       # C=16 -> kernel_size=3, padding=1

    key = jax.random.PRNGKey(0)
    kx, kw = jax.random.split(key)
    x = jax.random.normal(kx, (B, C, H, W), dtype=jnp.float32)
    # Conv1d(1, 1, kernel_size, bias=False) weight has shape (1, 1, k); keep taps.
    conv_w = (jax.random.normal(kw, (1, 1, kernel_size), dtype=jnp.float32) * 0.5)[0, 0]

    ref = _reference(x, conv_w)

    # f32 path (exact-tolerance check vs reference)
    out = channel_attention_conv(x, conv_w)
    out = jax.block_until_ready(out)
    assert out.shape == (B, C, H, W)
    assert jnp.allclose(out, ref, atol=1e-5, rtol=1e-5), "f32 mismatch vs reference"

    # bf16 I/O path (halves HBM traffic on this bandwidth-bound op); loose tol.
    out_bf16 = channel_attention_conv(x.astype(jnp.bfloat16), conv_w)
    out_bf16 = jax.block_until_ready(out_bf16)
    assert out_bf16.dtype == jnp.bfloat16
    assert jnp.allclose(out_bf16.astype(jnp.float32), ref, atol=5e-2, rtol=5e-2), \
        "bf16 mismatch vs reference"

    print("KERNEL_OK")
</pallas_src>

<mosaic_0001>
module attributes {stable_mosaic.version = 11 : i64} {
  func.func @_channel_attention_kernel(%arg0: i32, %arg1: memref<3xf32, #tpu.memory_space<smem>>, %arg2: memref<2x16x256xf32, #tpu.memory_space<vmem>>, %arg3: memref<2x16x256xf32, #tpu.memory_space<vmem>>) attributes {dimension_semantics = [#tpu.dimension_semantics<parallel>], iteration_bounds = array<i64: 1>, scalar_prefetch = 0 : i64, scratch_operands = 0 : i64, tpu.core_type = #tpu.core_type<tc>, window_params = [{transform_indices = @transform_0, window_bounds = array<i64: 3>}, {transform_indices = @transform_1, window_bounds = array<i64: 2, 16, 256>}, {transform_indices = @transform_2, window_bounds = array<i64: 2, 16, 256>}]} {
    %c0 = arith.constant 0 : index
    %c0_0 = arith.constant 0 : index
    %c0_1 = arith.constant 0 : index
    %0 = vector.load %arg2[%c0, %c0_0, %c0_1] : memref<2x16x256xf32, #tpu.memory_space<vmem>>, vector<2x16x256xf32>
    %cst = arith.constant dense<0.000000e+00> : vector<2x16xf32>
    %1 = vector.multi_reduction <add>, %0, %cst [2] : vector<2x16x256xf32> to vector<2x16xf32>
    %cst_2 = arith.constant dense<0xFF800000> : vector<2x16xf32>
    %2 = vector.multi_reduction <maximumf>, %0, %cst_2 [2] : vector<2x16x256xf32> to vector<2x16xf32>
    %cst_3 = arith.constant 3.906250e-03 : f32
    %3 = vector.broadcast %cst_3 : f32 to vector<2x16xf32>
    %4 = arith.mulf %1, %3 : vector<2x16xf32>
    %5 = arith.addf %4, %2 : vector<2x16xf32>
    %cst_4 = arith.constant 0.000000e+00 : f32
    %6 = vector.broadcast %cst_4 : f32 to vector<2x1xf32>
    %7 = tpu.concatenate %6, %5, %6 in 1 : vector<2x1xf32>, vector<2x16xf32>, vector<2x1xf32> -> vector<2x18xf32>
    %cst_5 = arith.constant 0.000000e+00 : f32
    %8 = vector.broadcast %cst_5 : f32 to vector<2x16xf32>
    %c0_6 = arith.constant 0 : index
    %9 = memref.load %arg1[%c0_6] : memref<3xf32, #tpu.memory_space<smem>>
    %10 = vector.extract_strided_slice %7 {offsets = [0, 0], sizes = [2, 16], strides = [1, 1]} : vector<2x18xf32> to vector<2x16xf32>
    %11 = vector.broadcast %9 : f32 to vector<2x16xf32>
    %12 = arith.mulf %11, %10 : vector<2x16xf32>
    %13 = arith.addf %8, %12 : vector<2x16xf32>
    %c1 = arith.constant 1 : index
    %14 = memref.load %arg1[%c1] : memref<3xf32, #tpu.memory_space<smem>>
    %15 = vector.extract_strided_slice %7 {offsets = [0, 1], sizes = [2, 16], strides = [1, 1]} : vector<2x18xf32> to vector<2x16xf32>
    %16 = vector.broadcast %14 : f32 to vector<2x16xf32>
    %17 = arith.mulf %16, %15 : vector<2x16xf32>
    %18 = arith.addf %13, %17 : vector<2x16xf32>
    %c2 = arith.constant 2 : index
    %19 = memref.load %arg1[%c2] : memref<3xf32, #tpu.memory_space<smem>>
    %20 = vector.extract_strided_slice %7 {offsets = [0, 2], sizes = [2, 16], strides = [1, 1]} : vector<2x18xf32> to vector<2x16xf32>
    %21 = vector.broadcast %19 : f32 to vector<2x16xf32>
    %22 = arith.mulf %21, %20 : vector<2x16xf32>
    %23 = arith.addf %18, %22 : vector<2x16xf32>
    %24 = arith.negf %23 : vector<2x16xf32>
    %25 = math.exp %24 : vector<2x16xf32>
    %cst_7 = arith.constant 1.000000e+00 : f32
    %26 = vector.broadcast %cst_7 : f32 to vector<2x16xf32>
    %27 = arith.addf %26, %25 : vector<2x16xf32>
    %28 = arith.divf %26, %27 : vector<2x16xf32>
    %c0_8 = arith.constant 0 : index
    %c0_9 = arith.constant 0 : index
    %c0_10 = arith.constant 0 : index
    %29 = vector.load %arg2[%c0_8, %c0_9, %c0_10] : memref<2x16x256xf32, #tpu.memory_space<vmem>>, vector<2x16x256xf32>
    %30 = vector.shape_cast %28 : vector<2x16xf32> to vector<2x16x1xf32>
    %31 = vector.broadcast %30 : vector<2x16x1xf32> to vector<2x16x256xf32>
    %32 = arith.mulf %29, %31 : vector<2x16x256xf32>
    %c0_11 = arith.constant 0 : index
    %c0_12 = arith.constant 0 : index
    %c0_13 = arith.constant 0 : index
    %33 = vector.load %arg3[%c0_11, %c0_12, %c0_13] : memref<2x16x256xf32, #tpu.memory_space<vmem>>, vector<2x16x256xf32>
    tpu.vector_store %arg3[%c0_11, %c0_12, %c0_13], %32 {strides = array<i32>} : memref<2x16x256xf32, #tpu.memory_space<vmem>>, vector<2x16x256xf32>,
    return
  }
  func.func @transform_0(%arg0: i32) -> i32 {
    %c0_i32 = arith.constant 0 : i32
    %c0_i32_0 = arith.constant 0 : i32
    return %c0_i32 : i32
  }
  func.func @transform_1(%arg0: i32) -> (i32, i32, i32) {
    %c0_i32 = arith.constant 0 : i32
    %c0_i32_0 = arith.constant 0 : i32
    %c0_i32_1 = arith.constant 0 : i32
    return %arg0, %c0_i32, %c0_i32_0 : i32, i32, i32
  }
  func.func @transform_2(%arg0: i32) -> (i32, i32, i32) {
    %c0_i32 = arith.constant 0 : i32
    %c0_i32_0 = arith.constant 0 : i32
    %c0_i32_1 = arith.constant 0 : i32
    return %arg0, %c0_i32, %c0_i32_0 : i32, i32, i32
  }
}

</mosaic_0001>

<bundles_post_ra>
// kernel: tpu_custom_call.1
= control target key start
LH: loop header
LB: loop body
LE: loop exit
PB: predicated region body
PF: predicated region fallthrough
CT: control target
= control target key end

     0   :  { %7 = vsyncpa [#allocation5], 0  ;;  %s371_s0 = inlined_call_operand.hbm [shape: f32[3], index: 0, kind: input, shape index: {}]   ;;  %s372_s1 = inlined_call_operand.hbm [shape: f32[2,16,256], index: 1, kind: input, shape index: {}]   ;;  %s373_s2 = inlined_call_operand.hbm [shape: f32[2,16,256], index: 2, kind: output, shape index: {}]  }
   0x1   :  { %8 = vsyncpa [#allocation3], 0 }
   0x2   :  { %9 = vsyncpa [#allocation4], 0  ;;  %s207_s11 = scalar_lea.hbm %s371_s0, 16 }
   0x3   :  { %p208_p0 = scmp.ne.s32.totalorder %s371_s0, %s207_s11  ;;  %p211_p1 = scmp.lt.u32.totalorder %s207_s11, %s371_s0 }
   0x5   :  { %p213_p2 = pnand %p211_p1, %p208_p0 }
   0x7   :  { %216 = shalt.err (!%p213_p2)
}
   0x8   :  { %s267_s16 = smov [#allocation2]   ;;  %s268_s19 = smov [#allocation6]  }
   0x9   :  { %17 = dma.hbm_to_smem %s371_s0, 16, %s267_s16, [#allocation5]  }
   0xa   :  { %s23_s20 = sshll.u32 %s268_s19, 4  ;;  %s217_s23 = scalar_lea.hbm %s372_s1, 1024  ;;  %s24_s20 = int_to_ptr.vmem [resolvable:$true] %s23_s20 }
   0xb   :  { %p218_p3 = scmp.ne.s32.totalorder %s372_s1, %s217_s23  ;;  %p221_p4 = scmp.lt.u32.totalorder %s217_s23, %s372_s1 }
   0xd   :  { %p223_p5 = pnand %p221_p4, %p218_p3 }
   0xf   :  { %226 = shalt.err (!%p223_p5)
}
  0x10   :  { %s227_s28 = scalar_lea.vmem %s24_s20, 1024  ;;  %p232_p7 = scmp.lt.s32.totalorder %s24_s20, %s24_s20 }
  0x11   :  { %p228_p6 = scmp.ne.s32.totalorder %s24_s20, %s227_s28  ;;  %p233_p8 = scmp.lt.s32.totalorder %s227_s28, %s227_s28 }
  0x13   :  { %p234_p9 = por %p233_p8, %p232_p7 }
  0x15   :  { %p235_p10 = pnand %p234_p9, %p228_p6 }
  0x17   :  { %238 = shalt.err (!%p235_p10)
}
  0x18   :  { %s269_s0 = smov 256   ;;  %s270_s29 = smov 16  }
  0x19   :  { %29 = dma.hbm_to_vmem [thread:$0]  %s372_s1, 1024, %s24_s20, [#allocation3], %s269_s0, %s269_s0, %s270_s29  }
  0x1a   :  { %261 = dma.done.wait [#allocation5], 16  }
  0x1b   :  { %262 = vsyncadd [#allocation5], 4294967280 }
  0x1c   :  { %263 = dma.done.wait [#allocation3], 1024  }
  0x1d   :  { %264 = vsyncadd [#allocation3], 4294966272 }
  0x1e   :  { %36 = sfence }
  0x1f   :  { %v316_v0 = vld [vmem:[#allocation6 + $0x20] sm:$0xff]  ;;  %v318_v1 = vld [vmem:[#allocation6 + $0x28] sm:$0xff]  ;;  %v326_v5 = vld [vmem:[#allocation6 + $0x30] sm:$0xff]  ;;  %v81_v16 = vlaneseq  ;;  %s194_s1 = sld [smem:[#allocation2 + $0x2]]  ;;  %s193_s4 = sld [smem:[#allocation2 + $0x1]]  ;;  %vm93_vm0 = vcmask 138312  }
  0x20   :  { %v320_v2 = vld [vmem:[#allocation6] sm:$0xff]  ;;  %v51_v3 = vadd.f32 %v318_v1, %v316_v0  ;;  %v324_v4 = vld [vmem:[#allocation6 + $0x8] sm:$0xff]  ;;  %v328_v6 = vld [vmem:[#allocation6 + $0x38] sm:$0xff]  ;;  %v63_v15 = vmax.f32 %v316_v0, %v318_v1  ;;  %vm104_vm1 = vcmask 1041409   ;;  %vm107_vm2 = vcmask 7168   ;;  %s271_s5 = smov 126  }
  0x21   :  { %v45_v7 = vadd.f32 %v324_v4, %v320_v2  ;;  %v332_v8 = vld [vmem:[#allocation6 + $0x10] sm:$0xff]  ;;  %v334_v9 = vld [vmem:[#allocation6 + $0x18] sm:$0xff]  ;;  %v54_v10 = vadd.f32 %v328_v6, %v326_v5  ;;  %v57_v13 = vmax.f32 %v320_v2, %v324_v4  ;;  %v66_v14 = vmax.f32 %v326_v5, %v328_v6  ;;  %s272_s6 = smov 127   ;;  %s111_s7 = sld [smem:[#allocation2]] }
  0x22   :  { %52 = vadd.xlane.f32.xlu1 %v51_v3  ;;  %v48_v11 = vadd.f32 %v334_v9, %v332_v8  ;;  %v60_v12 = vmax.f32 %v332_v8, %v334_v9  ;;  %v82_v19 = vand.u32 127, %v81_v16  ;;  %v85_v22 = vshrl.u32 %v81_v16, 7  ;;  %s273_s8 = smov [#allocation7]  }
  0x23   :  { %46 = vadd.xlane.f32.xlu0 %v45_v7  ;;  %vm109_vm3 = vcmask 138240   ;;  %s180_s9 = sshll.u32 %s273_s8, 4  ;;  %s181_s9 = int_to_ptr.vmem [resolvable:$true] %s180_s9 }
  0x24   :  { %v88_v23 = vadd.s32 4294967287, %v82_v19  ;;  %v83_v24 = vadd.s32 4294967295, %v82_v19  ;;  %v150_v61 = vsub.s32 1, %v85_v22  ;;  %v139_v62 = vsub.s32 0, %v85_v22  ;;  %s239_s10 = scalar_lea.vmem %s181_s9, 1024  ;;  %p244_p12 = scmp.lt.s32.totalorder %s181_s9, %s181_s9 }
  0x25   :  { %v124_v46 = vstv %s194_s1  ;;  %v116_v47 = vstv %s193_s4  ;;  %p240_p11 = scmp.ne.s32.totalorder %s181_s9, %s239_s10  ;;  %p245_p13 = scmp.lt.s32.totalorder %s239_s10, %s239_s10 }
  0x26   :  { %55 = vadd.xlane.f32.xlu1 %v54_v10  ;;  %v91_v29 = vsub.s32 %v88_v23, %v85_v22  ;;  %v86_v31 = vsub.s32 %v83_v24, %v85_v22 }
  0x27   :  { %49 = vadd.xlane.f32.xlu0 %v48_v11  ;;  %v112_v52 = vstv %s111_s7  ;;  %p246_p0 = por %p245_p13, %p244_p12 }
  0x29   :  { %p247_p1 = pnand %p246_p0, %p240_p11 }
  0x2a   :  { %61 = vmax.xlane.f32.xlu1 %v60_v12 }
  0x2b   :  { %58 = vmax.xlane.f32.xlu0 %v57_v13 }
  0x2e   :  { %67 = vmax.xlane.f32.xlu1 %v66_v14 }
  0x2f   :  { %64 = vmax.xlane.f32.xlu0 %v63_v15 }
  0xaf   :  { %v53_v17 = vpop.xlane.xlu1 %52 }
  0xb0   :  { %v47_v18 = vpop.xlane.xlu0 %46  ;;  %v71_v34 = vmul.f32 0.00390625, %v53_v17 }
  0xb1   :  { %v69_v25 = vmul.f32 0.00390625, %v47_v18 }
  0xb3   :  { %v56_v20 = vpop.xlane.xlu1 %55 }
  0xb4   :  { %v50_v21 = vpop.xlane.xlu0 %49  ;;  %v72_v33 = vmul.f32 0.00390625, %v56_v20 }
  0xb5   :  { %v70_v26 = vmul.f32 0.00390625, %v50_v21 }
  0xb7   :  { %v62_v27 = vpop.xlane.xlu1 %61 }
  0xb8   :  { %v59_v28 = vpop.xlane.xlu0 %58  ;;  %v74_v30 = vadd.f32 %v70_v26, %v62_v27 }
  0xb9   :  { %v73_v32 = vadd.f32 %v69_v25, %v59_v28 }
  0xba   :  { %v92_v38 = vrot.slane %v74_v30, %v91_v29 }
  0xbb   :  { %v68_v35 = vpop.xlane.xlu1 %67  ;;  %v87_v39 = vrot.slane %v73_v32, %v86_v31 }
  0xbc   :  { %v76_v36 = vadd.f32 %v72_v33, %v68_v35  ;;  %v65_v37 = vpop.xlane.xlu0 %64 }
  0xbd   :  { %v75_v40 = vadd.f32 %v71_v34, %v65_v37  ;;  %v94_v43 = vsel %vm93_vm0, %v92_v38, %v87_v39 }
  0xbe   :  { %v102_v41 = vrot.slane %v76_v36, %v91_v29 }
  0xbf   :  { %v98_v42 = vrot.slane %v75_v40, %v86_v31 }
  0xc1   :  { %v103_v44 = vsel %vm93_vm0, %v102_v41, %v98_v42 }
  0xc2   :  { %v105_v45 = vsel %vm104_vm1, %v103_v44, %v94_v43 }
  0xc3   :  { %v108_v48 = vsel %vm107_vm2, 0.0, %v105_v45 }
  0xc4   :  { %v110_v49 = vsel %vm109_vm3, %v108_v48, 0.0 }
  0xc5   :  { %v125_v50 = vmul.f32 %v124_v46, %v110_v49  ;;  %v117_v51 = vmul.f32 %v116_v47, %v110_v49  ;;  %v113_v53 = vmul.f32 %v112_v52, %v110_v49 }
  0xc7   :  { %127 = vrot.lane.b32.xlu1 %v125_v50, %s271_s5  ;;  %119 = vrot.lane.b32.xlu0 %v117_v51, %s272_s6 }
 0x139   :  { %v120_v54 = vpop.permute.xlu0 %119  ;;  %v128_v56 = vpop.permute.xlu1 %127 }
 0x13a   :  { %v122_v55 = vadd.f32 %v120_v54, %v113_v53 }
 0x13c   :  { %v130_v57 = vadd.f32 %v128_v56, %v122_v55 }
 0x13e   :  { %v195_v58 = vmul.f32 -1.442695, %v130_v57 }
 0x140   :  { %203 = vpow2.f32 %v195_v58 }
 0x14a   :  { %v204_v59 = vpop.eup %203 }
 0x14b   :  { %v134_v60 = vadd.f32 1.0, %v204_v59 }
 0x14d   :  { %205 = vrcp.f32 %v134_v60 }
 0x157   :  { %v206_v63 = vpop.eup %205 }
 0x158   :  { %v151_v3 = vrot.slane %v206_v63, %v150_v61  ;;  %v140_v7 = vrot.slane %v206_v63, %v139_v62 }
 0x15a   :  { %153 = vbcast.lane.b32.xlu0 %v151_v3, 256  ;;  %142 = vbcast.lane.b32.xlu1 %v140_v7, 256 }
 0x15e   :  { %146 = vbcast.lane.b32.xlu1 %v140_v7, 264 }
 0x162   :  { %157 = vbcast.lane.b32.xlu1 %v151_v3, 264 }
 0x1cc   :  { %v154_v10 = vpop.permute.xlu0 %153  ;;  %v143_v11 = vpop.permute.xlu1 %142 }
 0x1cd   :  { %v163_v12 = vmul.f32 %v154_v10, %v316_v0  ;;  %v164_v13 = vmul.f32 %v154_v10, %v318_v1  ;;  %v159_v14 = vmul.f32 %v143_v11, %v320_v2  ;;  %v160_v15 = vmul.f32 %v143_v11, %v324_v4 }
 0x1cf   :  { %171 = vst [vmem:[#allocation7 + $0x20] sm:$0xff] %v163_v12  ;;  %172 = vst [vmem:[#allocation7 + $0x28] sm:$0xff] %v164_v13 }
 0x1d0   :  { %167 = vst [vmem:[#allocation7] sm:$0xff] %v159_v14  ;;  %168 = vst [vmem:[#allocation7 + $0x8] sm:$0xff] %v160_v15  ;;  %v147_v16 = vpop.permute.xlu1 %146 }
 0x1d1   :  { %v161_v17 = vmul.f32 %v147_v16, %v332_v8  ;;  %v162_v18 = vmul.f32 %v147_v16, %v334_v9 }
 0x1d3   :  { %169 = vst [vmem:[#allocation7 + $0x10] sm:$0xff] %v161_v17  ;;  %170 = vst [vmem:[#allocation7 + $0x18] sm:$0xff] %v162_v18 }
 0x1d4   :  { %v158_v0 = vpop.permute.xlu1 %157 }
 0x1d5   :  { %v165_v1 = vmul.f32 %v158_v0, %v326_v5  ;;  %v166_v2 = vmul.f32 %v158_v0, %v328_v6 }
 0x1d7   :  { %173 = vst [vmem:[#allocation7 + $0x30] sm:$0xff] %v165_v1  ;;  %174 = vst [vmem:[#allocation7 + $0x38] sm:$0xff] %v166_v2 }
 0x1d8   :  { %250 = shalt.err (!%p247_p1)
}
 0x1d9   :  { %s251_s13 = scalar_lea.hbm %s373_s2, 1024 }
 0x1da   :  { %p252_p2 = scmp.ne.s32.totalorder %s373_s2, %s251_s13  ;;  %p255_p3 = scmp.lt.u32.totalorder %s251_s13, %s373_s2 }
 0x1dc   :  { %p257_p4 = pnand %p255_p3, %p252_p2 }
 0x1de   :  { %260 = shalt.err (!%p257_p4)
}
 0x1df   :  { %186 = dma.vmem_to_hbm [thread:$0]  %s181_s9, 1024, %s373_s2, [#allocation4], %s269_s0, %s269_s0, %s270_s29  }
 0x1e0   :  { %265 = dma.done.wait [#allocation4], 1024  }
 0x1e1   :  { %266 = vsyncadd [#allocation4], 4294966272 }
 0x1e2   :  { %190 = vsyncpa [#allocation3], 1 }
 0x1e3   :  { %191 = vsyncpa [#allocation4], 1 }
 0x1e4   :  { %192 = vsyncpa [#allocation5], 1 }

</bundles_post_ra>
